<compile_context>
chip_gen: v5e
topology: v5e:2x2
jax: 0.10.0
libtpu: 0.0.40
codegen_flags: <defaults>
</compile_context>

<pallas_src>
import math

import jax
import jax.numpy as jnp
from jax.experimental import pallas as pl
from jax.experimental.pallas import tpu as pltpu

K = 3              # kernel_size
NEG_SLOPE = 0.2    # LeakyReLU slope


def _round_up(x, m):
    return ((x + m - 1) // m) * m


def conv_block_kernel(p_ref, w_ref, b_ref, o_ref):
    # p_ref: (Kc_pad, tile_m)  bf16 im2col'd input columns (tile_m spatial positions)
    # w_ref: (tile_c, Kc_pad)  bf16 equalized (pre-scaled) weights
    # b_ref: (tile_c, 1)       f32 pre-scaled bias
    # o_ref: (tile_c, tile_m)  bf16 output (lane-dense: last dim multiple of 128)
    acc = jnp.dot(w_ref[...], p_ref[...],
                  preferred_element_type=jnp.float32)        # single MXU GEMM, K = Kc_pad
    y = acc + b_ref[...]                                     # f32 bias broadcast
    o_ref[...] = jnp.where(y >= 0.0, y, NEG_SLOPE * y).astype(o_ref.dtype)


def conv_block(x_nchw, weight_oihw, bias):
    """ConvBlock forward. x_nchw: (N, C_in, H, W); weight: (C_out, C_in, K, K).

    Returns (N, C_out, H, W) in bfloat16.
    """
    N, C_in, H, W = x_nchw.shape
    C_out = weight_oihw.shape[0]
    scale = math.sqrt(2.0 / (C_in * K * K))
    M = H * W
    NM = N * M
    Kc = K * K * C_in
    Kc_pad = _round_up(Kc, 16)         # clean bf16 sublane packing / MXU K dim

    # ---- C_out tiling: fill the 256-wide MXU when there is enough C_out ----
    if C_out <= 256:
        Cp = _round_up(C_out, 8)
        tile_c = Cp
    else:
        tile_c = 256
        Cp = _round_up(C_out, 256)

    # ---- Spatial tiling: as wide as the VMEM budget allows (memory-bound) ----
    def per_step_bytes(tm):
        return (2 * Kc_pad * tm          # patches block (bf16)
                + 2 * tile_c * Kc_pad    # weight block (bf16)
                + 4 * tile_c             # bias block (f32)
                + 2 * tile_c * tm)       # output block (bf16)

    vmem_budget = 40 * (1 << 20)         # headroom under v7x's 64 MiB physical VMEM
    tile_m = min(512, _round_up(NM, 128))
    while tile_m > 128 and 2 * per_step_bytes(tile_m) > vmem_budget:
        tile_m = max(128, _round_up(tile_m // 2, 128))
    NM_pad = _round_up(NM, tile_m)

    # Double-buffered working set + slack; bounded to v7x's 64 MiB.
    vmem_limit = int(min(64 * (1 << 20),
                         max(32 * (1 << 20), 4 * per_step_bytes(tile_m))))

    # ---- Wrapper-side im2col (plain JAX glue), batch folded into spatial ----
    x_bf = x_nchw.astype(jnp.bfloat16)
    xp = jnp.pad(x_bf, ((0, 0), (0, 0), (1, 1), (1, 1)))           # 'same' zero halo
    taps = [xp[:, :, kh:kh + H, kw:kw + W] for kh in range(K) for kw in range(K)]
    patches = jnp.stack(taps, axis=2)                              # (N, C_in, 9, H, W)
    patches = patches.reshape(N, Kc, M)                            # c_in-major, tap-minor
    patches = jnp.transpose(patches, (1, 0, 2)).reshape(Kc, NM)    # (Kc, N*H*W)
    if Kc_pad != Kc:
        patches = jnp.pad(patches, ((0, Kc_pad - Kc), (0, 0)))
    if NM_pad != NM:
        patches = jnp.pad(patches, ((0, 0), (0, NM_pad - NM)))

    # Fold equalized-LR scale into weights/bias once (matches (conv + b) * scale).
    w_mat = (weight_oihw.astype(jnp.float32).reshape(C_out, Kc) * scale
             ).astype(jnp.bfloat16)                                # (C_out, Kc)
    b_col = (bias.astype(jnp.float32) * scale).reshape(C_out, 1)   # (C_out, 1)
    if Kc_pad != Kc:
        w_mat = jnp.pad(w_mat, ((0, 0), (0, Kc_pad - Kc)))
    if Cp != C_out:
        w_mat = jnp.pad(w_mat, ((0, Cp - C_out), (0, 0)))
        b_col = jnp.pad(b_col, ((0, Cp - C_out), (0, 0)))

    # Grid: spatial tiles OUTER, C_out tiles INNER.  The patches block index is
    # constant across the inner c loop, so it is DMA'd once per spatial tile.
    grid = (NM_pad // tile_m, Cp // tile_c)
    out = pl.pallas_call(
        conv_block_kernel,
        out_shape=jax.ShapeDtypeStruct((Cp, NM_pad), jnp.bfloat16),
        grid=grid,
        in_specs=[
            pl.BlockSpec((Kc_pad, tile_m), lambda m, c: (0, m)),   # constant over c
            pl.BlockSpec((tile_c, Kc_pad), lambda m, c: (c, 0)),
            pl.BlockSpec((tile_c, 1), lambda m, c: (c, 0)),
        ],
        out_specs=pl.BlockSpec((tile_c, tile_m), lambda m, c: (c, m)),
        compiler_params=pltpu.CompilerParams(
            dimension_semantics=("parallel", "parallel"),
            vmem_limit_bytes=vmem_limit),
    )(patches, w_mat, b_col)

    # Already NCHW (channels-major, spatial lane-dense): drop padding, unfold batch.
    out = out[:C_out, :NM].reshape(C_out, N, M)
    return jnp.transpose(out, (1, 0, 2)).reshape(N, C_out, H, W)


def conv_block_reference(x_nchw, weight_oihw, bias):
    """Pure-JAX reference (same bf16 input quantization as the kernel path)."""
    C_in = x_nchw.shape[1]
    scale = math.sqrt(2.0 / (C_in * K * K))
    x_q = x_nchw.astype(jnp.bfloat16).astype(jnp.float32)
    w_q = (weight_oihw.astype(jnp.float32) * scale).astype(jnp.bfloat16).astype(jnp.float32)
    y = jax.lax.conv_general_dilated(
        x_q, w_q, window_strides=(1, 1), padding="SAME",
        dimension_numbers=("NCHW", "OIHW", "NCHW"),
        precision=jax.lax.Precision.HIGHEST)
    y = y + (bias.astype(jnp.float32) * scale)[None, :, None, None]
    return jnp.where(y >= 0, y, NEG_SLOPE * y)


if __name__ == "__main__":
    # Small deterministic example: batch=2, in_ch=4, out_ch=8, spatial=16x16.
    key = jax.random.PRNGKey(0)
    kx, kw, kb = jax.random.split(key, 3)
    N, C_in, C_out, H, W = 2, 4, 8, 16, 16

    x = jax.random.normal(kx, (N, C_in, H, W), dtype=jnp.float32)
    weight = 0.1 * jax.random.normal(kw, (C_out, C_in, K, K), dtype=jnp.float32)
    bias = 0.1 * jax.random.normal(kb, (C_out,), dtype=jnp.float32)

    out = conv_block(x, weight, bias)
    jax.block_until_ready(out)

    ref = conv_block_reference(x, weight, bias)
    assert out.shape == (N, C_out, H, W)
    # Kernel output is bf16 (halves writeback bytes); compare in f32 with bf16-level tolerance.
    err = jnp.max(jnp.abs(out.astype(jnp.float32) - ref))
    assert jnp.allclose(out.astype(jnp.float32), ref, atol=2e-2, rtol=2e-2), float(err)

    print("KERNEL_OK")
</pallas_src>

<mosaic_0001>
module attributes {stable_mosaic.version = 11 : i64} {
  func.func @conv_block_kernel(%arg0: i32, %arg1: i32, %arg2: memref<48x512xbf16, #tpu.memory_space<vmem>>, %arg3: memref<8x48xbf16, #tpu.memory_space<vmem>>, %arg4: memref<8x1xf32, #tpu.memory_space<vmem>>, %arg5: memref<8x512xbf16, #tpu.memory_space<vmem>>) attributes {dimension_semantics = [#tpu.dimension_semantics<parallel>, #tpu.dimension_semantics<parallel>], iteration_bounds = array<i64: 1, 1>, scalar_prefetch = 0 : i64, scratch_operands = 0 : i64, tpu.core_type = #tpu.core_type<tc>, window_params = [{transform_indices = @transform_0, window_bounds = array<i64: 48, 512>}, {transform_indices = @transform_1, window_bounds = array<i64: 8, 48>}, {transform_indices = @transform_2, window_bounds = array<i64: 8, 1>}, {transform_indices = @transform_3, window_bounds = array<i64: 8, 512>}]} {
    %c0 = arith.constant 0 : index
    %c0_0 = arith.constant 0 : index
    %0 = vector.load %arg3[%c0, %c0_0] : memref<8x48xbf16, #tpu.memory_space<vmem>>, vector<8x48xbf16>
    %c0_1 = arith.constant 0 : index
    %c0_2 = arith.constant 0 : index
    %1 = vector.load %arg2[%c0_1, %c0_2] : memref<48x512xbf16, #tpu.memory_space<vmem>>, vector<48x512xbf16>
    %cst = arith.constant dense<0.000000e+00> : vector<8x512xf32>
    %2 = tpu.matmul %0, %1, %cst {dimension_numbers = #tpu.dot_dimension_numbers<[1], [0], [0], [1], [0, 0, 1, 1], [], []>} : vector<8x48xbf16>, vector<48x512xbf16>, vector<8x512xf32> -> vector<8x512xf32>
    %c0_3 = arith.constant 0 : index
    %c0_4 = arith.constant 0 : index
    %3 = vector.load %arg4[%c0_3, %c0_4] : memref<8x1xf32, #tpu.memory_space<vmem>>, vector<8x1xf32>
    %4 = vector.broadcast %3 : vector<8x1xf32> to vector<8x512xf32>
    %5 = arith.addf %2, %4 : vector<8x512xf32>
    %cst_5 = arith.constant 0.000000e+00 : f32
    %6 = vector.broadcast %cst_5 : f32 to vector<8x512xf32>
    %7 = arith.cmpf oge, %5, %6 : vector<8x512xf32>
    %cst_6 = arith.constant 2.000000e-01 : f32
    %8 = vector.broadcast %cst_6 : f32 to vector<8x512xf32>
    %9 = arith.mulf %8, %5 : vector<8x512xf32>
    %10 = arith.select %7, %5, %9 : vector<8x512xi1>, vector<8x512xf32>
    %11 = arith.truncf %10 : vector<8x512xf32> to vector<8x512xbf16>
    %c0_7 = arith.constant 0 : index
    %c0_8 = arith.constant 0 : index
    %12 = vector.load %arg5[%c0_7, %c0_8] : memref<8x512xbf16, #tpu.memory_space<vmem>>, vector<8x512xbf16>
    tpu.vector_store %arg5[%c0_7, %c0_8], %11 {strides = array<i32>} : memref<8x512xbf16, #tpu.memory_space<vmem>>, vector<8x512xbf16>,
    return
  }
  func.func @transform_0(%arg0: i32, %arg1: i32) -> (i32, i32) {
    %c0_i32 = arith.constant 0 : i32
    %c0_i32_0 = arith.constant 0 : i32
    return %c0_i32, %arg0 : i32, i32
  }
  func.func @transform_1(%arg0: i32, %arg1: i32) -> (i32, i32) {
    %c0_i32 = arith.constant 0 : i32
    %c0_i32_0 = arith.constant 0 : i32
    return %arg1, %c0_i32 : i32, i32
  }
  func.func @transform_2(%arg0: i32, %arg1: i32) -> (i32, i32) {
    %c0_i32 = arith.constant 0 : i32
    %c0_i32_0 = arith.constant 0 : i32
    return %arg1, %c0_i32 : i32, i32
  }
  func.func @transform_3(%arg0: i32, %arg1: i32) -> (i32, i32) {
    %c0_i32 = arith.constant 0 : i32
    return %arg1, %arg0 : i32, i32
  }
}

</mosaic_0001>

<bundles_post_ra>
// kernel: tpu_custom_call.1
= control target key start
LH: loop header
LB: loop body
LE: loop exit
PB: predicated region body
PF: predicated region fallthrough
CT: control target
= control target key end

     0   :  { %8 = vsyncpa [#allocation3], 0  ;;  %s359_s0 = inlined_call_operand.hbm [shape: bf16[48,512], index: 0, kind: input, shape index: {}]   ;;  %s360_s1 = inlined_call_operand.vmem [shape: bf16[8,48], index: 1, kind: input, shape index: {}]   ;;  %s361_s2 = inlined_call_operand.vmem [shape: f32[8,1], index: 2, kind: input, shape index: {}]   ;;  %s362_s3 = inlined_call_operand.hbm [shape: bf16[8,512], index: 3, kind: output, shape index: {}]  }
   0x1   :  { %9 = vsyncpa [#allocation4], 0  ;;  %s14_s14 = sshll.u32 %s359_s0, 4  ;;  %s322_s15 = smov [#allocation2]   ;;  %s15_s14 = int_to_ptr.hbm [resolvable:$true] %s14_s14 }
   0x2   :  { %s16_s16 = sshll.u32 %s322_s15, 4  ;;  %s323_s17 = smov 256   ;;  %s17_s16 = int_to_ptr.vmem [resolvable:$true] %s16_s16 }
   0x3   :  { %s324_s18 = smov 16  }
   0x4   :  { %22 = dma.hbm_to_vmem [thread:$0]  %s15_s14, 1536, %s17_s16, [#allocation3], %s323_s17, %s323_s17, %s324_s18  }
   0x5   :  { %318 = dma.done.wait [#allocation3], 1536  }
   0x6   :  { %319 = vsyncadd [#allocation3], 4294965760  ;;  %v325_v0 = vmov 0   ;;  %v234_v1 = vld [vmem:[#allocation2 + $0x40] sm:$0xf]  ;;  %vm111_vm0 = vcmask 392192  }
   0x7   :  { %269 = vset.pattern.permute.xlu0 %v325_v0  ;;  %v262_v2 = vld [vmem:[#allocation2 + $0x4c] sm:$0xf0]  ;;  %v260_v3 = vld [vmem:[#allocation2 + $0x44] sm:$0xf]  ;;  %v236_v5 = vld [vmem:[#allocation2 + $0x50] sm:$0xf0] }
   0x8   :  { %v235_v4 = vor.u32 %v262_v2, %v234_v1  ;;  %v242_v6 = vld [vmem:[#allocation2 + $0x48] sm:$0xf]  ;;  %v263_v7 = vld [vmem:[#allocation2 + $0x54] sm:$0xf0]  ;;  %v239_v8 = vor.u32 %v260_v3, %v236_v5  ;;  %v261_v10 = vld [vmem:[#allocation2 + $0x4c] sm:$0xf] }
   0x9   :  { %v243_v9 = vor.u32 %v263_v7, %v242_v6  ;;  %v244_v11 = vld [vmem:[#allocation2 + $0x58] sm:$0xf0]  ;;  %v218_v12 = vld [vmem:[#allocation2 + $0x20] sm:$0xf]  ;;  %v258_v14 = vld [vmem:[#allocation2 + $0x2c] sm:$0xf0] }
   0xa   :  { %120 = vmatpush.bf16.msra.mxu0 %v235_v4  ;;  %v247_v13 = vor.u32 %v261_v10, %v244_v11  ;;  %v256_v15 = vld [vmem:[#allocation2 + $0x24] sm:$0xf]  ;;  %v220_v16 = vld [vmem:[#allocation2 + $0x30] sm:$0xf0]  ;;  %133 = vmatpush.bf16.msra.mxu1 %v239_v8  ;;  %v219_v17 = vor.u32 %v258_v14, %v218_v12  ;;  %v226_v19 = vld [vmem:[#allocation2 + $0x28] sm:$0xf] }
   0xb   :  { %146 = vmatpush.bf16.msra.mxu2 %v243_v9  ;;  %v223_v18 = vor.u32 %v256_v15, %v220_v16  ;;  %v259_v20 = vld [vmem:[#allocation2 + $0x34] sm:$0xf0]  ;;  %v257_v21 = vld [vmem:[#allocation2 + $0x2c] sm:$0xf]  ;;  %v228_v23 = vld [vmem:[#allocation2 + $0x38] sm:$0xf0] }
   0xc   :  { %159 = vmatpush.bf16.msra.mxu3 %v247_v13  ;;  %v227_v22 = vor.u32 %v259_v20, %v226_v19  ;;  %v202_v24 = vld [vmem:[#allocation2] sm:$0xf]  ;;  %v254_v25 = vld [vmem:[#allocation2 + $0xc] sm:$0xf0]  ;;  %v231_v26 = vor.u32 %v257_v21, %v228_v23  ;;  %v252_v27 = vld [vmem:[#allocation2 + $0x4] sm:$0xf] }
   0xd   :  { %v204_v28 = vld [vmem:[#allocation2 + $0x10] sm:$0xf0]  ;;  %v210_v29 = vld [vmem:[#allocation2 + $0x8] sm:$0xf]  ;;  %v203_v30 = vor.u32 %v254_v25, %v202_v24  ;;  %v255_v31 = vld [vmem:[#allocation2 + $0x14] sm:$0xf0] }
   0xe   :  { %121 = vmatpush.bf16.msra.mxu0 %v219_v17  ;;  %v253_v32 = vld [vmem:[#allocation2 + $0xc] sm:$0xf]  ;;  %v212_v33 = vld [vmem:[#allocation2 + $0x18] sm:$0xf0]  ;;  %134 = vmatpush.bf16.msra.mxu1 %v223_v18  ;;  %v207_v34 = vor.u32 %v252_v27, %v204_v28  ;;  %v211_v35 = vor.u32 %v255_v31, %v210_v29  ;;  %v45_v36 = vld [vmem:[%s361_s2] sm:$0xff]  ;;  %s190_s24 = sshll.u32 %s362_s3, 4  ;;  %s191_s24 = int_to_ptr.hbm [resolvable:$true] %s190_s24 }
   0xf   :  { %147 = vmatpush.bf16.msra.mxu2 %v227_v22  ;;  %v215_v37 = vor.u32 %v253_v32, %v212_v33  ;;  %48 = vperm.xlu0 %269, %v45_v36   ;;  %v32_v38 = vld [vmem:[%s360_s1] sm:$0xf]  ;;  %s326_s1 = smov [#allocation5]  }
  0x10   :  { %160 = vmatpush.bf16.msra.mxu3 %v231_v26  ;;  %s188_s2 = sshll.u32 %s326_s1, 4  ;;  %s189_s2 = int_to_ptr.vmem [resolvable:$true] %s188_s2 }
  0x12   :  { %122 = vmatpush.bf16.msra.mxu0 %v203_v30  ;;  %135 = vmatpush.bf16.msra.mxu1 %v207_v34 }
  0x13   :  { %148 = vmatpush.bf16.msra.mxu2 %v211_v35 }
  0x14   :  { %161 = vmatpush.bf16.msra.mxu3 %v215_v37 }
  0x15   :  { %248 = vmatmul.msk.bf16.vlgmr.msra.gmra.mxu0 %vm111_vm0, %v32_v38  ;;  %249 = vmatmul.msk.bf16.vlgmr.msra.gmra.mxu1 %vm111_vm0, %v32_v38 }
  0x16   :  { %250 = vmatmul.msk.bf16.vlgmr.msra.gmra.mxu2 %vm111_vm0, %v32_v38 }
  0x17   :  { %251 = vmatmul.msk.bf16.vlgmr.msra.gmra.mxu3 %vm111_vm0, %v32_v38 }
  0x81   :  { %v49_v39 = vpop.permute.xlu0 %48 }
  0x92   :  { %v124_v40 = vpop.f32.mrf.mxu0  ;;  %v137_v41 = vpop.f32.mrf.mxu1 }
  0x93   :  { %v125_v42 = vadd.f32 %v124_v40, %v49_v39  ;;  %v138_v43 = vadd.f32 %v137_v41, %v49_v39 }
  0x95   :  { %vm167_vm1 = vcmp.ge.f32.partialorder %v125_v42, 0.0  ;;  %v171_v44 = vmul.f32 0.2, %v125_v42  ;;  %vm168_vm2 = vcmp.ge.f32.partialorder %v138_v43, 0.0  ;;  %v172_v45 = vmul.f32 0.2, %v138_v43 }
  0x97   :  { %v175_v46 = vsel %vm167_vm1, %v125_v42, %v171_v44  ;;  %v176_v47 = vsel %vm168_vm2, %v138_v43, %v172_v45 }
  0x98   :  { %v179_v49 = vpack.c.bf16 %v176_v47, %v175_v46 }
  0x99   :  { %v150_v48 = vpop.f32.mrf.mxu2 }
  0x9a   :  { %v151_v50 = vadd.f32 %v150_v48, %v49_v39  ;;  %v163_v51 = vpop.f32.mrf.mxu3  ;;  %v126_v52 = vpop.f32.mrf.mxu0  ;;  %181 = vst [vmem:[#allocation5] sm:$0xff] %v179_v49 }
  0x9b   :  { %v164_v53 = vadd.f32 %v163_v51, %v49_v39  ;;  %v139_v54 = vpop.f32.mrf.mxu1 }
  0x9c   :  { %vm169_vm3 = vcmp.ge.f32.partialorder %v151_v50, 0.0  ;;  %v173_v55 = vmul.f32 0.2, %v151_v50 }
  0x9d   :  { %vm170_vm4 = vcmp.ge.f32.partialorder %v164_v53, 0.0  ;;  %v174_v56 = vmul.f32 0.2, %v164_v53 }
  0x9e   :  { %v177_v57 = vsel %vm169_vm3, %v151_v50, %v173_v55 }
  0x9f   :  { %v178_v58 = vsel %vm170_vm4, %v164_v53, %v174_v56 }
  0xa0   :  { %v180_v59 = vpack.c.bf16 %v178_v58, %v177_v57 }
  0xa1   :  { %v152_v60 = vpop.f32.mrf.mxu2 }
  0xa2   :  { %182 = vst [vmem:[#allocation5 + $0x8] sm:$0xff] %v180_v59  ;;  %v165_v61 = vpop.f32.mrf.mxu3 }
  0xa3   :  { %193 = dma.vmem_to_hbm [thread:$0]  %s189_s2, 256, %s191_s24, [#allocation4]  }
  0xa4   :  { %320 = dma.done.wait [#allocation4], 256  }
  0xa5   :  { %321 = vsyncadd [#allocation4], 4294967040 }
  0xa6   :  { %198 = vsyncpa [#allocation3], 1 }
  0xa7   :  { %199 = vsyncpa [#allocation4], 1 }

</bundles_post_ra>
